<compile_context>
chip_gen: v7x
topology: tpu7x:2x2x1
jax: 0.10.0
libtpu: 0.0.40
codegen_flags: <defaults>
</compile_context>

<pallas_src>
import functools

import jax
import jax.numpy as jnp
from jax.experimental import pallas as pl
from jax.experimental.pallas import tpu as pltpu

F_PAD = 128    # padded input-feature width  (lane-dense phase-0 operands)
H_PAD = 128    # padded hidden width
OUT_PAD = 128  # padded output-channel width (lane-dense output stores)


def _round_up(v, m):
    return (v + m - 1) // m * m


def _vmem_budget_bytes():
    """~75% of physical VMEM (96 MiB on v5e/v6e, 48 MiB on v7x), clamped."""
    try:
        phys = int(pltpu.get_tpu_info().vmem_capacity_bytes)
    except Exception:
        phys = 64 * 1024 * 1024  # conservative (v7x-sized) fallback
    return max(32 * 1024 * 1024, min(phys * 3 // 4, 100 * 1024 * 1024))


def _fused_graphsage_kernel(a_ref, x_ref, w1l_ref, w1r_ref, b1_ref,
                            w2cat_ref, b2_ref, o_ref, z_ref, r_ref,
                            *, tile_rows, out_pad, a_resident):
    layer = pl.program_id(0)   # 0 = conv1 + layer-2 projection, 1 = layer-2 aggregation
    i = pl.program_id(1)       # row-tile index
    row = pl.multiple_of(i * tile_rows, tile_rows)

    def a_tile():
        # A is either VMEM-resident (full matrix, slice rows here) or already
        # the (tile_rows, pad_n) row tile streamed by the pipeline.
        return a_ref[pl.ds(row, tile_rows), :] if a_resident else a_ref[...]

    @pl.when(layer == 0)
    def _phase0():
        a = a_tile()                                               # [tm, N]  bf16
        x = x_ref[...]                                             # [N, Fp]  bf16
        # mean neighbor aggregation for this row tile (MXU, f32 accumulate)
        agg = jnp.dot(a, x, preferred_element_type=jnp.float32)    # [tm, Fp] f32
        x_self = x_ref[pl.ds(row, tile_rows), :]                   # [tm, Fp] bf16
        h = (jnp.dot(agg.astype(jnp.bfloat16), w1l_ref[...],
                     preferred_element_type=jnp.float32)
             + jnp.dot(x_self, w1r_ref[...],
                       preferred_element_type=jnp.float32)
             + b1_ref[...])
        h = jnp.maximum(h, 0.0)                                    # ReLU
        # TODO(synk): training-mode dropout (p=0.5 via pltpu.prng_*) masks h here.
        # merged layer-2 projection: h @ [W2_l | W2_r]  (single MXU pass)
        proj = jnp.dot(h.astype(jnp.bfloat16), w2cat_ref[...],
                       preferred_element_type=jnp.float32)         # [tm, 2*out_pad]
        z_ref[pl.ds(row, tile_rows), :] = proj[:, :out_pad].astype(jnp.bfloat16)
        r_ref[pl.ds(row, tile_rows), :] = proj[:, out_pad:].astype(jnp.bfloat16)
        # o_ref intentionally NOT written: its block index is pinned to 0 during
        # phase 0, so no zero/garbage block ever gets written back to HBM.

    @pl.when(layer == 1)
    def _phase1():
        a = a_tile()                                               # [tm, N] bf16
        # reassociated layer-2 aggregation: A @ (h @ W2_l)
        out = jnp.dot(a, z_ref[...], preferred_element_type=jnp.float32)
        out = out + r_ref[pl.ds(row, tile_rows), :].astype(jnp.float32) + b2_ref[...]
        o_ref[...] = out.astype(o_ref.dtype)


def graphsage_pallas(adj, x, params):
    """Fused 2-layer GraphSAGE forward (eval mode) as a single pallas_call."""
    n, f_in = x.shape
    hidden = params["w1_l"].shape[1]
    out_channels = params["w2_l"].shape[1]
    assert f_in <= F_PAD and hidden <= H_PAD and out_channels <= OUT_PAD

    budget = _vmem_budget_bytes()

    # ---- node-dimension tiling / padding ------------------------------------
    # Approximate VMEM working set (bytes): inputs are double-buffered by the
    # pipeline even with constant index maps.
    # TODO(synk): single-buffer the constant-index-map inputs
    # (pipeline_mode=pl.Buffered(1)) to halve their footprint.
    fixed_bytes = 2 * (2 * F_PAD * H_PAD * 2      # W1_l, W1_r (bf16, dbl-buf)
                       + H_PAD * 2 * OUT_PAD * 2  # [W2_l|W2_r] (bf16, dbl-buf)
                       + (H_PAD + OUT_PAD) * 4)   # biases (f32, dbl-buf)
    n_pad8 = _round_up(n, 8)
    if n_pad8 <= 512:
        tile_rows = n_pad8                        # single row tile
    else:
        # Bigger row tiles amortize the ~0.35us/step pipeline overhead and get
        # closer to the HBM roofline; bounded by the streamed working set.
        tile_rows = 128
        for tr in (512, 256, 128):
            pn = _round_up(n, tr)
            streamed = 4 * tr * pn + 1024 * pn + 1024 * tr + fixed_bytes
            if streamed <= budget:
                tile_rows = tr
                break
    pad_n = _round_up(n, tile_rows)
    num_tiles = pad_n // tile_rows

    # A-resident when the full (double-buffered) bf16 adjacency plus X/z/r/out
    # fits the budget: A is then DMA'd from HBM once instead of twice.
    resident_bytes = (4 * pad_n * pad_n           # A (bf16, dbl-buf)
                      + 1024 * pad_n              # X dbl-buf + z + r scratch
                      + 1024 * tile_rows          # output block (f32, dbl-buf)
                      + fixed_bytes)
    a_resident = resident_bytes <= budget
    # TODO(synk): for graphs too large for the full-N z/r VMEM scratch, split
    # into two pallas_calls (z/r via HBM) so the row-tile axis can be marked
    # "parallel" and sharded across v7x's two TensorCores.

    # ---- pack / pad operands (bf16 matmul operands, f32 biases) --------------
    def pad2(a, rows, cols):
        pr, pc = rows - a.shape[0], cols - a.shape[1]
        return a if pr == 0 and pc == 0 else jnp.pad(a, ((0, pr), (0, pc)))

    # A is expected to arrive already in bf16 (built/stored upstream) so no
    # standalone f32->bf16 HBM pass over N x N precedes the kernel.
    a_bf = adj if adj.dtype == jnp.bfloat16 else adj.astype(jnp.bfloat16)
    a_bf = pad2(a_bf, pad_n, pad_n)
    x_bf = pad2(x.astype(jnp.bfloat16), pad_n, F_PAD)

    w1l = pad2(params["w1_l"], F_PAD, H_PAD).astype(jnp.bfloat16)
    w1r = pad2(params["w1_r"], F_PAD, H_PAD).astype(jnp.bfloat16)
    b1 = pad2(params["b1"], 1, H_PAD).astype(jnp.float32)
    w2cat = jnp.concatenate(
        [pad2(params["w2_l"], H_PAD, OUT_PAD),
         pad2(params["w2_r"], H_PAD, OUT_PAD)], axis=1).astype(jnp.bfloat16)
    b2 = pad2(params["b2"], 1, OUT_PAD).astype(jnp.float32)

    # ---- advisory cost estimate (actual traffic) -----------------------------
    a_passes = 1 if a_resident else 2
    flops = (2 * pad_n * pad_n * F_PAD            # A @ X
             + 2 * pad_n * F_PAD * H_PAD * 2      # layer-1 projections
             + 2 * pad_n * H_PAD * 2 * OUT_PAD    # merged layer-2 projection
             + 2 * pad_n * pad_n * OUT_PAD)       # A @ z
    bytes_accessed = (a_passes * pad_n * pad_n * 2          # A (bf16)
                      + pad_n * F_PAD * 2                   # X (bf16)
                      + (2 * F_PAD * H_PAD + H_PAD * 2 * OUT_PAD) * 2
                      + (H_PAD + OUT_PAD) * 4               # weights / biases
                      + pad_n * OUT_PAD * 4)                # output written once

    kernel = functools.partial(_fused_graphsage_kernel, tile_rows=tile_rows,
                               out_pad=OUT_PAD, a_resident=a_resident)

    def resident(shape):
        return pl.BlockSpec(shape, lambda l, i: (0,) * len(shape))

    if a_resident:
        a_spec = pl.BlockSpec((pad_n, pad_n), lambda l, i: (0, 0))      # DMA'd once
    else:
        a_spec = pl.BlockSpec((tile_rows, pad_n), lambda l, i: (i, 0))  # streamed

    out_padded = pl.pallas_call(
        kernel,
        out_shape=jax.ShapeDtypeStruct((pad_n, OUT_PAD), jnp.float32),
        grid_spec=pltpu.PrefetchScalarGridSpec(
            num_scalar_prefetch=0,
            grid=(2, num_tiles),                                  # (phase, row tile)
            in_specs=[
                a_spec,                                           # A
                resident((pad_n, F_PAD)),                         # X (VMEM resident)
                resident((F_PAD, H_PAD)),                         # W1_l
                resident((F_PAD, H_PAD)),                         # W1_r
                resident((1, H_PAD)),                             # b1
                resident((H_PAD, 2 * OUT_PAD)),                   # [W2_l | W2_r]
                resident((1, OUT_PAD)),                           # b2
            ],
            # Phase 0 pins the output block to 0 (and never writes it); phase 1
            # writes each row tile exactly once -> single HBM store per block.
            out_specs=pl.BlockSpec((tile_rows, OUT_PAD), lambda l, i: (l * i, 0)),
            scratch_shapes=[
                pltpu.VMEM((pad_n, OUT_PAD), jnp.bfloat16),   # z = h @ W2_l
                pltpu.VMEM((pad_n, OUT_PAD), jnp.bfloat16),   # r = h @ W2_r (bf16)
            ]),
        compiler_params=pltpu.CompilerParams(
            # Phase 1 of every tile reads z/r written by phase 0 of ALL tiles,
            # so the grid must stay sequential on a single core.
            dimension_semantics=("arbitrary", "arbitrary"),
            vmem_limit_bytes=budget),
        cost_estimate=pl.CostEstimate(flops=flops, transcendentals=0,
                                      bytes_accessed=bytes_accessed),
    )(a_bf, x_bf, w1l, w1r, b1, w2cat, b2)

    return out_padded[:n, :out_channels]


def build_mean_adj(edge_index, num_nodes, dtype=jnp.bfloat16):
    """Dense row-normalized adjacency: A[i, j] = 1/deg_in(i) for edge j -> i.

    Emitted directly in bf16 (the kernel's MXU operand dtype) so no standalone
    f32->bf16 HBM pass over the N x N matrix precedes the kernel.
    """
    src, dst = edge_index[0], edge_index[1]
    adj = jnp.zeros((num_nodes, num_nodes), jnp.float32).at[dst, src].add(1.0)
    deg = adj.sum(axis=1, keepdims=True)
    return (adj / jnp.maximum(deg, 1.0)).astype(dtype)  # zero in-deg rows stay 0


def init_params(key, in_channels, hidden, out_channels):
    """Synthetic parameters with PyG SAGEConv shapes, stored transposed [in, out]."""
    ks = jax.random.split(key, 6)

    def w(k, fin, fout):
        bound = 1.0 / jnp.sqrt(jnp.float32(fin))
        return jax.random.uniform(k, (fin, fout), jnp.float32, -bound, bound)

    return {
        "w1_l": w(ks[0], in_channels, hidden),
        "w1_r": w(ks[1], in_channels, hidden),
        "b1": jax.random.uniform(ks[2], (1, hidden), jnp.float32, -0.1, 0.1),
        "w2_l": w(ks[3], hidden, out_channels),
        "w2_r": w(ks[4], hidden, out_channels),
        "b2": jax.random.uniform(ks[5], (1, out_channels), jnp.float32, -0.1, 0.1),
    }


@jax.jit
def graphsage_forward(params, x, adj):
    return graphsage_pallas(adj, x, params)


def reference_forward_f32(params, x, adj):
    """Pure-f32 eval-mode reference (canonical math, no reassociation)."""
    agg = adj @ x
    h = jnp.maximum(agg @ params["w1_l"] + x @ params["w1_r"] + params["b1"], 0.0)
    return (adj @ h) @ params["w2_l"] + h @ params["w2_r"] + params["b2"]


def reference_forward_bf16(params, x, adj):
    """Reference mirroring the kernel's bf16-operand / f32-accumulate math."""
    bf = jnp.bfloat16
    a = adj.astype(bf)
    xb = x.astype(bf)
    agg = jnp.dot(a, xb, preferred_element_type=jnp.float32)
    h = jnp.maximum(
        jnp.dot(agg.astype(bf), params["w1_l"].astype(bf),
                preferred_element_type=jnp.float32)
        + jnp.dot(xb, params["w1_r"].astype(bf),
                  preferred_element_type=jnp.float32)
        + params["b1"], 0.0)
    z = jnp.dot(h.astype(bf), params["w2_l"].astype(bf),
                preferred_element_type=jnp.float32).astype(bf)
    r = jnp.dot(h.astype(bf), params["w2_r"].astype(bf),
                preferred_element_type=jnp.float32).astype(bf)
    return (jnp.dot(a, z, preferred_element_type=jnp.float32)
            + r.astype(jnp.float32) + params["b2"])


if __name__ == "__main__":
    IN_CHANNELS = 14   # hard-coded in the PyTorch module's conv1
    HIDDEN = 16
    OUT_CHANNELS = 7
    N_NODES = 8
    N_EDGES = 16

    key = jax.random.PRNGKey(0)
    kx, ke, ka, kp = jax.random.split(key, 4)

    x = jax.random.normal(kx, (N_NODES, IN_CHANNELS), jnp.float32)
    edge_index = jax.random.randint(ke, (2, N_EDGES), 0, N_NODES, dtype=jnp.int32)
    edge_attr = jax.random.normal(ka, (N_EDGES, 4), jnp.float32)  # unused by SAGEConv

    params = init_params(kp, IN_CHANNELS, HIDDEN, OUT_CHANNELS)
    adj = build_mean_adj(edge_index, N_NODES)      # bf16 adjacency (kernel operand)
    adj_f32 = adj.astype(jnp.float32)              # same values, for the references

    out = graphsage_forward(params, x, adj)
    out = jax.block_until_ready(out)
    assert out.shape == (N_NODES, OUT_CHANNELS)
    assert bool(jnp.all(jnp.isfinite(out)))

    # tight check against a reference that mirrors the kernel's bf16/f32 math
    ref_bf16 = reference_forward_bf16(params, x, adj_f32)
    err_bf16 = float(jnp.max(jnp.abs(out - ref_bf16)))
    assert err_bf16 < 1e-2, f"max abs err vs bf16-mirrored reference: {err_bf16}"

    # loose check against the canonical f32 eval-mode math (bf16 rounding only)
    ref_f32 = reference_forward_f32(params, x, adj_f32)
    err_f32 = float(jnp.max(jnp.abs(out - ref_f32)))
    assert err_f32 < 0.25, f"max abs err vs f32 reference: {err_f32}"

    print("KERNEL_OK")
</pallas_src>

<mosaic_0001>
module attributes {stable_mosaic.version = 11 : i64} {
  func.func @_fused_graphsage_kernel(%arg0: i32, %arg1: i32, %arg2: memref<8x8xbf16, #tpu.memory_space<vmem>>, %arg3: memref<8x128xbf16, #tpu.memory_space<vmem>>, %arg4: memref<128x128xbf16, #tpu.memory_space<vmem>>, %arg5: memref<128x128xbf16, #tpu.memory_space<vmem>>, %arg6: memref<1x128xf32, #tpu.memory_space<vmem>>, %arg7: memref<128x256xbf16, #tpu.memory_space<vmem>>, %arg8: memref<1x128xf32, #tpu.memory_space<vmem>>, %arg9: memref<8x128xf32, #tpu.memory_space<vmem>>, %arg10: memref<8x128xbf16, #tpu.memory_space<vmem>>, %arg11: memref<8x128xbf16, #tpu.memory_space<vmem>>) attributes {dimension_semantics = [#tpu.dimension_semantics<arbitrary>, #tpu.dimension_semantics<arbitrary>], iteration_bounds = array<i64: 2, 1>, scalar_prefetch = 0 : i64, scratch_operands = 2 : i64, tpu.core_type = #tpu.core_type<tc>, window_params = [{pipeline_mode = #tpu.pipeline_mode<synchronous>, transform_indices = @transform_0, window_bounds = array<i64: 8, 8>}, {pipeline_mode = #tpu.pipeline_mode<synchronous>, transform_indices = @transform_1, window_bounds = array<i64: 8, 128>}, {pipeline_mode = #tpu.pipeline_mode<synchronous>, transform_indices = @transform_2, window_bounds = array<i64: 128, 128>}, {pipeline_mode = #tpu.pipeline_mode<synchronous>, transform_indices = @transform_3, window_bounds = array<i64: 128, 128>}, {pipeline_mode = #tpu.pipeline_mode<synchronous>, transform_indices = @transform_4, window_bounds = array<i64: 1, 128>}, {pipeline_mode = #tpu.pipeline_mode<synchronous>, transform_indices = @transform_5, window_bounds = array<i64: 128, 256>}, {pipeline_mode = #tpu.pipeline_mode<synchronous>, transform_indices = @transform_6, window_bounds = array<i64: 1, 128>}, {transform_indices = @transform_7, window_bounds = array<i64: 8, 128>}]} {
    %c8_i32 = arith.constant 8 : i32
    %0 = arith.muli %arg1, %c8_i32 : i32
    %1 = tpu.assume_multiple %0, 8 : i32
    %c0_i32 = arith.constant 0 : i32
    %2 = arith.cmpi eq, %arg0, %c0_i32 : i32
    %3 = arith.extui %2 : i1 to i32
    %c0_i32_0 = arith.constant 0 : i32
    %4 = arith.cmpi ne, %3, %c0_i32_0 : i32
    scf.if %4 {
      %8 = arith.index_cast %1 : i32 to index
      %c0 = arith.constant 0 : index
      %9 = vector.load %arg2[%8, %c0] : memref<8x8xbf16, #tpu.memory_space<vmem>>, vector<8x8xbf16>
      %c0_2 = arith.constant 0 : index
      %c0_3 = arith.constant 0 : index
      %10 = vector.load %arg3[%c0_2, %c0_3] : memref<8x128xbf16, #tpu.memory_space<vmem>>, vector<8x128xbf16>
      %cst = arith.constant dense<0.000000e+00> : vector<8x128xf32>
      %11 = tpu.matmul %9, %10, %cst {dimension_numbers = #tpu.dot_dimension_numbers<[1], [0], [0], [1], [0, 0, 1, 1], [], []>} : vector<8x8xbf16>, vector<8x128xbf16>, vector<8x128xf32> -> vector<8x128xf32>
      %12 = arith.index_cast %1 : i32 to index
      %c0_4 = arith.constant 0 : index
      %13 = vector.load %arg3[%12, %c0_4] : memref<8x128xbf16, #tpu.memory_space<vmem>>, vector<8x128xbf16>
      %14 = arith.truncf %11 : vector<8x128xf32> to vector<8x128xbf16>
      %c0_5 = arith.constant 0 : index
      %c0_6 = arith.constant 0 : index
      %15 = vector.load %arg4[%c0_5, %c0_6] : memref<128x128xbf16, #tpu.memory_space<vmem>>, vector<128x128xbf16>
      %cst_7 = arith.constant dense<0.000000e+00> : vector<8x128xf32>
      %16 = tpu.matmul %14, %15, %cst_7 {dimension_numbers = #tpu.dot_dimension_numbers<[1], [0], [0], [1], [0, 0, 1, 1], [], []>} : vector<8x128xbf16>, vector<128x128xbf16>, vector<8x128xf32> -> vector<8x128xf32>
      %c0_8 = arith.constant 0 : index
      %c0_9 = arith.constant 0 : index
      %17 = vector.load %arg5[%c0_8, %c0_9] : memref<128x128xbf16, #tpu.memory_space<vmem>>, vector<128x128xbf16>
      %cst_10 = arith.constant dense<0.000000e+00> : vector<8x128xf32>
      %18 = tpu.matmul %13, %17, %cst_10 {dimension_numbers = #tpu.dot_dimension_numbers<[1], [0], [0], [1], [0, 0, 1, 1], [], []>} : vector<8x128xbf16>, vector<128x128xbf16>, vector<8x128xf32> -> vector<8x128xf32>
      %19 = arith.addf %16, %18 : vector<8x128xf32>
      %c0_11 = arith.constant 0 : index
      %c0_12 = arith.constant 0 : index
      %20 = vector.load %arg6[%c0_11, %c0_12] : memref<1x128xf32, #tpu.memory_space<vmem>>, vector<1x128xf32>
      %21 = vector.broadcast %20 : vector<1x128xf32> to vector<8x128xf32>
      %22 = arith.addf %19, %21 : vector<8x128xf32>
      %cst_13 = arith.constant 0.000000e+00 : f32
      %23 = vector.broadcast %cst_13 : f32 to vector<8x128xf32>
      %24 = arith.maximumf %22, %23 : vector<8x128xf32>
      %25 = arith.truncf %24 : vector<8x128xf32> to vector<8x128xbf16>
      %c0_14 = arith.constant 0 : index
      %c0_15 = arith.constant 0 : index
      %26 = vector.load %arg7[%c0_14, %c0_15] : memref<128x256xbf16, #tpu.memory_space<vmem>>, vector<128x256xbf16>
      %cst_16 = arith.constant dense<0.000000e+00> : vector<8x256xf32>
      %27 = tpu.matmul %25, %26, %cst_16 {dimension_numbers = #tpu.dot_dimension_numbers<[1], [0], [0], [1], [0, 0, 1, 1], [], []>} : vector<8x128xbf16>, vector<128x256xbf16>, vector<8x256xf32> -> vector<8x256xf32>
      %28 = vector.extract_strided_slice %27 {offsets = [0, 0], sizes = [8, 128], strides = [1, 1]} : vector<8x256xf32> to vector<8x128xf32>
      %29 = arith.truncf %28 : vector<8x128xf32> to vector<8x128xbf16>
      %30 = arith.index_cast %1 : i32 to index
      %c0_17 = arith.constant 0 : index
      %31 = vector.load %arg10[%30, %c0_17] : memref<8x128xbf16, #tpu.memory_space<vmem>>, vector<8x128xbf16>
      tpu.vector_store %arg10[%30, %c0_17], %29 {strides = array<i32>} : memref<8x128xbf16, #tpu.memory_space<vmem>>, vector<8x128xbf16>,
      %32 = vector.extract_strided_slice %27 {offsets = [0, 128], sizes = [8, 128], strides = [1, 1]} : vector<8x256xf32> to vector<8x128xf32>
      %33 = arith.truncf %32 : vector<8x128xf32> to vector<8x128xbf16>
      %34 = arith.index_cast %1 : i32 to index
      %c0_18 = arith.constant 0 : index
      %35 = vector.load %arg11[%34, %c0_18] : memref<8x128xbf16, #tpu.memory_space<vmem>>, vector<8x128xbf16>
      tpu.vector_store %arg11[%34, %c0_18], %33 {strides = array<i32>} : memref<8x128xbf16, #tpu.memory_space<vmem>>, vector<8x128xbf16>,
    } else {
    }
    %c1_i32 = arith.constant 1 : i32
    %5 = arith.cmpi eq, %arg0, %c1_i32 : i32
    %6 = arith.extui %5 : i1 to i32
    %c0_i32_1 = arith.constant 0 : i32
    %7 = arith.cmpi ne, %6, %c0_i32_1 : i32
    scf.if %7 {
      %8 = arith.index_cast %1 : i32 to index
      %c0 = arith.constant 0 : index
      %9 = vector.load %arg2[%8, %c0] : memref<8x8xbf16, #tpu.memory_space<vmem>>, vector<8x8xbf16>
      %c0_2 = arith.constant 0 : index
      %c0_3 = arith.constant 0 : index
      %10 = vector.load %arg10[%c0_2, %c0_3] : memref<8x128xbf16, #tpu.memory_space<vmem>>, vector<8x128xbf16>
      %cst = arith.constant dense<0.000000e+00> : vector<8x128xf32>
      %11 = tpu.matmul %9, %10, %cst {dimension_numbers = #tpu.dot_dimension_numbers<[1], [0], [0], [1], [0, 0, 1, 1], [], []>} : vector<8x8xbf16>, vector<8x128xbf16>, vector<8x128xf32> -> vector<8x128xf32>
      %12 = arith.index_cast %1 : i32 to index
      %c0_4 = arith.constant 0 : index
      %13 = vector.load %arg11[%12, %c0_4] : memref<8x128xbf16, #tpu.memory_space<vmem>>, vector<8x128xbf16>
      %14 = arith.extf %13 : vector<8x128xbf16> to vector<8x128xf32>
      %15 = arith.addf %11, %14 : vector<8x128xf32>
      %c0_5 = arith.constant 0 : index
      %c0_6 = arith.constant 0 : index
      %16 = vector.load %arg8[%c0_5, %c0_6] : memref<1x128xf32, #tpu.memory_space<vmem>>, vector<1x128xf32>
      %17 = vector.broadcast %16 : vector<1x128xf32> to vector<8x128xf32>
      %18 = arith.addf %15, %17 : vector<8x128xf32>
      %c0_7 = arith.constant 0 : index
      %c0_8 = arith.constant 0 : index
      %19 = vector.load %arg9[%c0_7, %c0_8] : memref<8x128xf32, #tpu.memory_space<vmem>>, vector<8x128xf32>
      tpu.vector_store %arg9[%c0_7, %c0_8], %18 {strides = array<i32>} : memref<8x128xf32, #tpu.memory_space<vmem>>, vector<8x128xf32>,
    } else {
    }
    return
  }
  func.func @transform_0(%arg0: i32, %arg1: i32) -> (i32, i32) {
    %c0_i32 = arith.constant 0 : i32
    %c0_i32_0 = arith.constant 0 : i32
    %c0_i32_1 = arith.constant 0 : i32
    return %c0_i32, %c0_i32_0 : i32, i32
  }
  func.func @transform_1(%arg0: i32, %arg1: i32) -> (i32, i32) {
    %c0_i32 = arith.constant 0 : i32
    %c0_i32_0 = arith.constant 0 : i32
    %c0_i32_1 = arith.constant 0 : i32
    return %c0_i32, %c0_i32_0 : i32, i32
  }
  func.func @transform_2(%arg0: i32, %arg1: i32) -> (i32, i32) {
    %c0_i32 = arith.constant 0 : i32
    %c0_i32_0 = arith.constant 0 : i32
    %c0_i32_1 = arith.constant 0 : i32
    return %c0_i32, %c0_i32_0 : i32, i32
  }
  func.func @transform_3(%arg0: i32, %arg1: i32) -> (i32, i32) {
    %c0_i32 = arith.constant 0 : i32
    %c0_i32_0 = arith.constant 0 : i32
    %c0_i32_1 = arith.constant 0 : i32
    return %c0_i32, %c0_i32_0 : i32, i32
  }
  func.func @transform_4(%arg0: i32, %arg1: i32) -> (i32, i32) {
    %c0_i32 = arith.constant 0 : i32
    %c0_i32_0 = arith.constant 0 : i32
    %c0_i32_1 = arith.constant 0 : i32
    return %c0_i32, %c0_i32_0 : i32, i32
  }
  func.func @transform_5(%arg0: i32, %arg1: i32) -> (i32, i32) {
    %c0_i32 = arith.constant 0 : i32
    %c0_i32_0 = arith.constant 0 : i32
    %c0_i32_1 = arith.constant 0 : i32
    return %c0_i32, %c0_i32_0 : i32, i32
  }
  func.func @transform_6(%arg0: i32, %arg1: i32) -> (i32, i32) {
    %c0_i32 = arith.constant 0 : i32
    %c0_i32_0 = arith.constant 0 : i32
    %c0_i32_1 = arith.constant 0 : i32
    return %c0_i32, %c0_i32_0 : i32, i32
  }
  func.func @transform_7(%arg0: i32, %arg1: i32) -> (i32, i32) {
    %0 = arith.muli %arg0, %arg1 : i32
    %c0_i32 = arith.constant 0 : i32
    %c0_i32_0 = arith.constant 0 : i32
    return %0, %c0_i32 : i32, i32
  }
}

</mosaic_0001>

<bundles_post_ra>
// kernel: graphsage_forward.1
= control target key start
LH: loop header
LB: loop body
LE: loop exit
PB: predicated region body
PF: predicated region fallthrough
CT: control target
= control target key end

     0   :  { %12 = vsyncpa [#allocation5], 0  ;;  %s1328_s0 = inlined_call_operand.vmem [shape: bf16[8,8], index: 0, kind: input, shape index: {}]   ;;  %s1329_s1 = inlined_call_operand.vmem [shape: bf16[8,128], index: 1, kind: input, shape index: {}]   ;;  %s1330_s2 = inlined_call_operand.vmem [shape: bf16[128,128], index: 2, kind: input, shape index: {}]   ;;  %s1331_s3 = inlined_call_operand.vmem [shape: bf16[128,128], index: 3, kind: input, shape index: {}]   ;;  %s1332_s4 = inlined_call_operand.vmem [shape: f32[1,128], index: 4, kind: input, shape index: {}]   ;;  %s1333_s5 = inlined_call_operand.vmem [shape: bf16[128,256], index: 5, kind: input, shape index: {}]   ;;  %s1334_s6 = inlined_call_operand.vmem [shape: f32[1,128], index: 6, kind: input, shape index: {}]   ;;  %s1335_s7 = inlined_call_operand.hbm [shape: f32[8,128], index: 7, kind: output, shape index: {}]  }
   0x1   :  { %14 = vsyncpa [#allocation5 + $0x1], 0  ;;  %s1153_s24 = smov 0   ;;  %s1155_s25 = smov 0  }
   0x2   :  { %s1157_s26 = smov 0  }
   0x3 LB: > { %s852_s27 = sadd.s32 4294967295, %s1105_s26   ;;  %s853_s28 = sadd.s32 4294967294, %s1105_s26   ;;  %s1105_s26 = sphi %s1157_s26, %s20_s26   ;;  %s1101_s25 = sphi %s1155_s25, %s1338_s25   ;;  %s1097_s24 = sphi %s1153_s24, %s1337_s24  }
   0x4   : > { %s32_s29 = sadd.s32 1, %s1101_s25  ;;  %p855_p0 = scmp.ge.s32.totalorder %s1105_s26, 1 }
   0x5   : > { %p34_p1 = scmp.ge.s32.totalorder %s32_s29, 2  ;;  %p244_p2 = scmp.lt.s32.totalorder %s1105_s26, 3 }
   0x7   : > { %s1340_s29 = smov (%p34_p1, %s32_s29), 0  ;;  %p245_p3 = pnand %p855_p0, %p244_p2 }
   0x8   : > { %p856_p4 = scmp.ne.s32.totalorder (!%p245_p3), %s1097_s24, 0 }
   0x9   : > { %248 = sbr.rel (%p245_p3) target bundleno = 921 (0x399), region = 48 }
  0x10   : > { %277 = sbr.rel (%p856_p4) target bundleno = 671 (0x29f), region = 52  ;;  %v283_v0 = vld [vmem:[%s1329_s1] sm:$0xf] (!%p856_p4)  ;;  %vm288_vm0 = vcmask (!%p856_p4), 1043456   ;;  %vm284_vm1 = vcmask (!%p856_p4), 64512   ;;  %v1107_v1 = vmov (!%p856_p4), 0.0  }
  0x11   : > { %920 = vmatprep.subr.bf16.mxu0 (!%p856_p4), %v1107_v1  ;;  %v290_v2 = vsel (!%p856_p4), %vm288_vm0, %v283_v0, 0  ;;  %vm1108_vm2 = vmmov (!%p856_p4), 0   ;;  %v282_v3 = vld [vmem:[%s1328_s0] sm:$0xf] (!%p856_p4)  ;;  %926 = vmatprep.subr.bf16.mxu1 (!%p856_p4), %v1107_v1  ;;  %v1015_v6 = vld [vmem:[%s1331_s3 + $0x8] sm:$0xff] (!%p856_p4)   ;;  %v1017_v8 = vld [vmem:[%s1331_s3 + $0x10] sm:$0xff] (!%p856_p4)  }
  0x12   : > { %922 = vmatprep.mubr.msk.bf16.mxu0 (!%p856_p4), %vm1108_vm2, %v1107_v1  ;;  %v1013_v4 = vld [vmem:[%s1331_s3] sm:$0xff] (!%p856_p4)   ;;  %921 = vmatpush3.bf16.msra.mxu0 (!%p856_p4), %v290_v2  ;;  %v1016_v7 = vld [vmem:[%s1330_s2 + $0x8] sm:$0xff] (!%p856_p4)   ;;  %v1018_v9 = vld [vmem:[%s1330_s2 + $0x10] sm:$0xff] (!%p856_p4)   ;;  %v1109_v46 = vmov (!%p856_p4), 0  }
  0x13   : > { %927 = vmatpush3.bf16.msra.mxu1 (!%p856_p4), %v1013_v4  ;;  %946 = vmatprep.subr.bf16.mxu0 (!%p856_p4), %v1107_v1  ;;  %v1014_v5 = vld [vmem:[%s1330_s2] sm:$0xff] (!%p856_p4)   ;;  %v1019_v10 = vld [vmem:[%s1331_s3 + $0x18] sm:$0xff] (!%p856_p4)   ;;  %v1023_v14 = vld [vmem:[%s1331_s3 + $0x28] sm:$0xff] (!%p856_p4)  }
  0x14   : > { %928 = vmatprep.subr.bf16.mxu1 (!%p856_p4), %v1107_v1  ;;  %942 = vmatprep.mubr.msk.bf16.mxu1 (!%p856_p4), %vm1108_vm2, %v1107_v1  ;;  %v1020_v11 = vld [vmem:[%s1330_s2 + $0x18] sm:$0xff] (!%p856_p4)   ;;  %v1021_v12 = vld [vmem:[%s1331_s3 + $0x20] sm:$0xff] (!%p856_p4)   ;;  %v1024_v15 = vld [vmem:[%s1330_s2 + $0x28] sm:$0xff] (!%p856_p4)  }
  0x15   : > { %923 = vmatmul.mubr.msk.bf16.vlgmr.msra.gmra.mrb[0].mxu0 (!%p856_p4), %vm284_vm1, %v282_v3  ;;  %v1022_v13 = vld [vmem:[%s1330_s2 + $0x20] sm:$0xff] (!%p856_p4)   ;;  %v1025_v16 = vld [vmem:[%s1331_s3 + $0x30] sm:$0xff] (!%p856_p4)   ;;  %v1027_v18 = vld [vmem:[%s1331_s3 + $0x38] sm:$0xff] (!%p856_p4)  }
  0x16   : > { %947 = vmatpush3.bf16.msra.mxu0 (!%p856_p4), %v1014_v5  ;;  %962 = vmatprep.mubr.msk.bf16.mxu0 (!%p856_p4), %vm1108_vm2, %v1107_v1  ;;  %v1026_v17 = vld [vmem:[%s1330_s2 + $0x30] sm:$0xff] (!%p856_p4)   ;;  %v1028_v19 = vld [vmem:[%s1330_s2 + $0x38] sm:$0xff] (!%p856_p4)   ;;  %v334_v20 = vld [vmem:[%s1329_s1] sm:$0xf] (!%p856_p4) }
  0x17   : > { %929 = vmatpush3.bf16.msra.mxu1 %v1015_v6  ;;  %948 = vmatprep.subr.bf16.mxu0 %v1107_v1  ;;  %v1029_v21 = vld [vmem:[%s1333_s5] ss:$8 sps:$4 sm:$0xff]   ;;  %v1031_v22 = vld [vmem:[%s1333_s5 + $0x4] ss:$8 sps:$4 sm:$0xff]   ;;  %v1034_v23 = vld [vmem:[%s1333_s5 + $0x14] ss:$8 sps:$4 sm:$0xff]  }
  0x18   : > { %930 = vmatprep.subr.bf16.mxu1 %v1107_v1  ;;  %v1032_v24 = vld [vmem:[%s1333_s5 + $0x10] ss:$8 sps:$4 sm:$0xff]   ;;  %v1037_v25 = vld [vmem:[%s1333_s5 + $0x24] ss:$8 sps:$4 sm:$0xff]   ;;  %v1035_v26 = vld [vmem:[%s1333_s5 + $0x20] ss:$8 sps:$4 sm:$0xff]  }
  0x19   : > { %v1040_v27 = vld [vmem:[%s1333_s5 + $0x34] ss:$8 sps:$4 sm:$0xff]   ;;  %v1038_v28 = vld [vmem:[%s1333_s5 + $0x30] ss:$8 sps:$4 sm:$0xff]   ;;  %v1043_v29 = vld [vmem:[%s1333_s5 + $0x44] ss:$8 sps:$4 sm:$0xff]  }
  0x1a   : > { %949 = vmatpush3.bf16.msra.mxu0 %v1016_v7  ;;  %v1041_v30 = vld [vmem:[%s1333_s5 + $0x40] ss:$8 sps:$4 sm:$0xff]   ;;  %v1044_v31 = vld [vmem:[%s1333_s5 + $0x50] ss:$8 sps:$4 sm:$0xff]   ;;  %v1046_v32 = vld [vmem:[%s1333_s5 + $0x54] ss:$8 sps:$4 sm:$0xff]  }
  0x1b   : > { %931 = vmatpush3.bf16.msra.mxu1 %v1017_v8  ;;  %950 = vmatprep.subr.bf16.mxu0 %v1107_v1  ;;  %v1049_v41 = vld [vmem:[%s1333_s5 + $0x64] ss:$8 sps:$4 sm:$0xff]   ;;  %v1047_v43 = vld [vmem:[%s1333_s5 + $0x60] ss:$8 sps:$4 sm:$0xff]   ;;  %v1052_v44 = vld [vmem:[%s1333_s5 + $0x74] ss:$8 sps:$4 sm:$0xff]  }
  0x1c   : > { %932 = vmatprep.subr.bf16.mxu1 %v1107_v1  ;;  %v1050_v45 = vld [vmem:[%s1333_s5 + $0x70] ss:$8 sps:$4 sm:$0xff]   ;;  %v874_v48 = vld [vmem:[%s1332_s4] ss:$0 sm:$0xff] }
  0x1e   : > { %951 = vmatpush3.bf16.msra.mxu0 %v1018_v9 }
  0x1f   : > { %933 = vmatpush3.bf16.msra.mxu1 %v1019_v10  ;;  %952 = vmatprep.subr.bf16.mxu0 %v1107_v1 }
  0x20   : > { %934 = vmatprep.subr.bf16.mxu1 %v1107_v1 }
  0x22   : > { %953 = vmatpush3.bf16.msra.mxu0 %v1020_v11 }
  0x23   : > { %935 = vmatpush3.bf16.msra.mxu1 %v1021_v12  ;;  %954 = vmatprep.subr.bf16.mxu0 %v1107_v1 }
  0x24   : > { %936 = vmatprep.subr.bf16.mxu1 %v1107_v1 }
  0x26   : > { %955 = vmatpush3.bf16.msra.mxu0 %v1022_v13 }
  0x27   : > { %937 = vmatpush3.bf16.msra.mxu1 %v1023_v14  ;;  %956 = vmatprep.subr.bf16.mxu0 %v1107_v1 }
  0x28   : > { %938 = vmatprep.subr.bf16.mxu1 %v1107_v1 }
  0x2a   : > { %957 = vmatpush3.bf16.msra.mxu0 %v1024_v15 }
  0x2b   : > { %939 = vmatpush3.bf16.msra.mxu1 %v1025_v16  ;;  %958 = vmatprep.subr.bf16.mxu0 %v1107_v1 }
  0x2c   : > { %940 = vmatprep.subr.bf16.mxu1 %v1107_v1 }
  0x2e   : > { %959 = vmatpush3.bf16.msra.mxu0 %v1026_v17 }
  0x2f   : > { %941 = vmatpush3.bf16.msra.mxu1 %v1027_v18  ;;  %960 = vmatprep.subr.bf16.mxu0 %v1107_v1 }
  0x30   : > { %650 = vmatprep.subr.bf16.mxu1 %v1031_v22 }
  0x32   : > { %943 = vmatmul.mubr.bf16.vlgmr.msra.gmra.mrb[0].mxu1 %v334_v20  ;;  %961 = vmatpush3.bf16.msra.mxu0 %v1028_v19 }
  0x33   : > { %651 = vmatpush1.bf16.msra.mxu1 %v1029_v21  ;;  %682 = vmatprep.mubr.bf16.mxu1 %v1109_v46 }
  0x34   : > { %652 = vmatprep.subr.bf16.mxu1 %v1034_v23 }
  0x37   : > { %653 = vmatpush1.bf16.msra.mxu1 %v1032_v24 }
  0x38   : > { %654 = vmatprep.subr.bf16.mxu1 %v1037_v25 }
  0x3b   : > { %655 = vmatpush1.bf16.msra.mxu1 %v1035_v26 }
  0x3c   : > { %656 = vmatprep.subr.bf16.mxu1 %v1040_v27 }
  0x3f   : > { %657 = vmatpush1.bf16.msra.mxu1 %v1038_v28 }
  0x40   : > { %658 = vmatprep.subr.bf16.mxu1 %v1043_v29 }
  0x43   : > { %659 = vmatpush1.bf16.msra.mxu1 %v1041_v30 }
  0x44   : > { %660 = vmatprep.subr.bf16.mxu1 %v1046_v32 }
  0x47   : > { %661 = vmatpush1.bf16.msra.mxu1 %v1044_v31 }
  0x48   : > { %662 = vmatprep.subr.bf16.mxu1 %v1049_v41 }
  0x4b   : > { %663 = vmatpush1.bf16.msra.mxu1 %v1047_v43 }
  0x4c   : > { %664 = vmatprep.subr.bf16.mxu1 %v1052_v44 }
  0x4f   : > { %665 = vmatpush1.bf16.msra.mxu1 %v1050_v45 }
  0xe8   : > { %v326_v33 = vpop.f32.mrb[0].mxu0 }
  0xe9   : > { %v335_v34 = vpack.c.bf16 %v326_v33, %v326_v33  ;;  %v924_v35 = vpop.f32.mrb[1].mxu0 }
  0xea   : > { %v329_v36 = vpop.f32.mrb[2].mxu0 }
  0xeb   : > { %v925_v37 = vpop.f32.mrb[3].mxu0  ;;  %963 = vmatmul.mubr.bf16.vlgmr.msra.gmra.mrb[4].mxu0 %v335_v34 }
 0x105   : > { %v450_v38 = vpop.f32.mrb[0].mxu1 }
 0x106   : > { %v944_v39 = vpop.f32.mrb[1].mxu1 }
 0x107   : > { %v453_v40 = vpop.f32.mrb[2].mxu1 }
 0x108   : > { %v945_v42 = vpop.f32.mrb[3].mxu1 }
 0x1be   : > { %v538_v47 = vpop.f32.mrb[4].mxu0 }
 0x1bf   : > { %v539_v49 = vadd.f32 %v538_v47, %v450_v38  ;;  %v964_v50 = vpop.f32.mrb[5].mxu0 }
 0x1c0   : > { %v541_v51 = vpop.f32.mrb[6].mxu0 }
 0x1c1   : > { %v551_v52 = vadd.f32 %v874_v48, %v539_v49  ;;  %v965_v53 = vpop.f32.mrb[7].mxu0 }
 0x1c3   : > { %v552_v54 = vmax.f32 %v551_v52, 0.0 }
 0x1c5   : > { %v553_v55 = vpack.c.bf16 %v552_v54, %v552_v54 }
 0x1c7   : > { %683 = vmatmul.mubr.bf16.vlgmr.msra.gmra.mrb[4].mxu1 %v553_v55 }
 0x29a   : > { %v684_v56 = vpop.f32.mrb[4].mxu1 }
 0x29b   : > { %v691_v57 = vpack.c.bf16 %v684_v56, %v684_v56  ;;  %v686_v58 = vpop.f32.mrb[5].mxu1 }
 0x29c   : > { %v695_v59 = vpack.c.bf16 %v686_v58, %v686_v58  ;;  %v688_v60 = vpop.f32.mrb[6].mxu1 }
 0x29d   : > { %694 = vst [vmem:[#allocation2] sm:$0xf] %v691_v57  ;;  %v689_v61 = vpop.f32.mrb[7].mxu1 }
 0x29e   : > { %698 = vst [vmem:[#allocation3] sm:$0xf] %v695_v59 }
 0x29f PF: > { %p891_p5 = scmp.ne.s32.totalorder %s1097_s24, 1 }
 0x2a0   : > { %vm717_vm3 = vcmask (!%p891_p5), 1043456   ;;  %v1110_v63 = vmov (!%p891_p5), 0.0   ;;  %vm1111_vm4 = vmmov (!%p891_p5), 0   ;;  %v707_v1 = vld [vmem:[%s1328_s0] sm:$0xf] (!%p891_p5)  ;;  %vm713_vm5 = vcmask (!%p891_p5), 64512  }
 0x2a1   : > { %702 = sbr.rel (%p891_p5) target bundleno = 898 (0x382), region = 56  ;;  %966 = vmatprep.subr.bf16.mxu0 (!%p891_p5), %v1110_v63  ;;  %968 = vmatprep.mubr.msk.bf16.mxu0 (!%p891_p5), %vm1111_vm4, %v1110_v63  ;;  %v893_v5 = vld [vmem:[%s1334_s6] ss:$0 sm:$0xff] (!%p891_p5) }
 0x2a4   : > { %v708_v62 = vld [vmem:[#allocation2] sm:$0xf] (!%p891_p5) }
 0x2a5   : > { %v719_v0 = vsel (!%p891_p5), %vm717_vm3, %v708_v62, 0  ;;  %v711_v2 = vld [vmem:[#allocation3] sm:$0xf] (!%p891_p5) }
 0x2a6   : > { %967 = vmatpush3.bf16.msra.mxu0 (!%p891_p5), %v719_v0  ;;  %v712_v3 = vunpack.c.l.bf16 (!%p891_p5), %v711_v2 }
 0x2a9   : > { %969 = vmatmul.mubr.msk.bf16.vlgmr.msra.gmra.mrb[0].mxu0 %vm713_vm5, %v707_v1 }
 0x37c   : > { %v755_v4 = vpop.f32.mrb[0].mxu0 }
 0x37d   : > { %v756_v6 = vadd.f32 %v755_v4, %v712_v3  ;;  %v970_v7 = vpop.f32.mrb[1].mxu0 }
 0x37e   : > { %v758_v8 = vpop.f32.mrb[2].mxu0 }
 0x37f   : > { %v768_v9 = vadd.f32 %v893_v5, %v756_v6  ;;  %v971_v10 = vpop.f32.mrb[3].mxu0 }
 0x381   : > { %769 = vst [vmem:[#allocation4] sm:$0xff] %v768_v9 }
 0x382 PF: > { %p1294_p6 = scmp.eq.s32.totalorder %s852_s27, 1  ;;  %s1112_s15 = smov [#allocation4]  }
 0x383   : > { %s785_s16 = sshll.u32 %s1112_s15, 4  ;;  %s786_s16 = int_to_ptr.vmem [resolvable:$true] %s785_s16 }
 0x384   : > { %s1053_s17 = scalar_lea.vmem %s786_s16, 128  ;;  %s1059_s18 = scalar_lea.vmem %s786_s16, 256 }
 0x385   : > { %p1054_p7 = scmp.ne.s32.totalorder %s786_s16, %s1053_s17  ;;  %p1060_p10 = scmp.lt.s32.totalorder %s786_s16, %s786_s16 }
 0x386   : > { %p1061_p11 = scmp.lt.s32.totalorder %s1059_s18, %s1053_s17 }
 0x387   : > { %p1055_p8 = pnand %p1054_p7, %p1294_p6 }
 0x388   : > { %p1062_p12 = por %p1061_p11, %p1060_p10 }
 0x389   : > { %p1056_p9 = pneg %p1055_p8 }
 0x38b   : > { %p1063_p13 = pnand %p1062_p12, %p1056_p9 }
 0x38d   : > { %1066 = shalt.err (!%p1063_p13)
}
 0x38e   : > { %s1067_s20 = scalar_lea.hbm %s1335_s7, 128 }
 0x38f   : > { %p1068_p0 = scmp.ne.s32.totalorder %s1335_s7, %s1067_s20  ;;  %p1073_p3 = scmp.lt.u32.totalorder %s1067_s20, %s1335_s7 }
 0x391   : > { %p1069_p1 = pnand %p1068_p0, %p1294_p6 }
 0x393   : > { %p1070_p2 = pneg %p1069_p1 }
 0x395   : > { %p1075_p4 = pnand %p1073_p3, %p1070_p2 }
 0x397   : > { %1078 = shalt.err (!%p1075_p4)
}
 0x398   : > { %973 = dma.vmem_to_hbm [thread:$0]  (%p1294_p6), %s786_s16, 128, %s1335_s7, [#allocation5]  }
 0x399 PF: > { %p981_p5 = scmp.ge.s32.totalorder %s1105_s26, 2  ;;  %p982_p7 = scmp.eq.s32.totalorder %s853_s28, 1 }
 0x39b   : > { %p977_p8 = pnand %p982_p7, %p981_p5 }
 0x39d   : > { %1092 = dma.done.wait (!%p977_p8), [#allocation5], 128  }
 0x39e   : > { %1094 = vsyncadd (!%p977_p8), [#allocation5], 4294967168  ;;  %s20_s26 = sadd.s32 1, %s1105_s26   ;;  %s1337_s24 = smov %s1101_s25 }
 0x39f   : > { %p17_p9 = scmp.ge.s32.totalorder %s20_s26, 4   ;;  %s1338_s25 = smov %s1340_s29 }
 0x3a1   :  { %19 = sbr.rel (!%p17_p9) target bundleno = 3 (0x3), region = 94 }
 0x3a8   :  { %803 = vsyncpa [#allocation5], 1 }
 0x3a9   :  { %805 = vsyncpa [#allocation5 + $0x1], 1 }

</bundles_post_ra>
